<compile_context>
chip_gen: v7x
topology: tpu7x:2x2x1
jax: 0.10.0
libtpu: 0.0.40
codegen_flags: <defaults>
</compile_context>

<pallas_src>
import jax
import jax.numpy as jnp
from jax.experimental import pallas as pl
from jax.experimental.pallas import tpu as pltpu


# ----------------------------- Pallas kernel ------------------------------ #

def _identity_kernel(x_ref, o_ref):
    # Whole-tile copy: load the VMEM tile and store it to the output tile.
    o_ref[...] = x_ref[...]


_TILE_BYTES = 2 * 1024 * 1024           # ~2 MiB/tile: safe in scoped VMEM,
                                        # near HBM roofline on v5e/v6e/v7x.
_LANE_WIDTHS = (8192, 4096, 2048, 1024, 512, 256, 128)


def _identity_copy_2d(x2d: jax.Array) -> jax.Array:
    """Tiled, lane-dense identity copy of a 2D array via pallas_call."""
    rows, cols = x2d.shape
    itemsize = jnp.dtype(x2d.dtype).itemsize

    # Largest sublane-aligned row block keeping one tile under ~2 MiB.
    tr = max(1, _TILE_BYTES // max(1, cols * itemsize))
    if tr >= rows:
        tr = rows                        # single block: full extent is legal
    else:
        tr = max(8, (tr // 8) * 8)       # (8,128) sublane alignment

    grid = (pl.cdiv(rows, tr),)          # 1-D grid, full-width blocks

    return pl.pallas_call(
        _identity_kernel,
        out_shape=jax.ShapeDtypeStruct((rows, cols), x2d.dtype),
        grid_spec=pltpu.PrefetchScalarGridSpec(
            num_scalar_prefetch=0,
            grid=grid,
            in_specs=[pl.BlockSpec((tr, cols), lambda i: (i, 0))],
            out_specs=pl.BlockSpec((tr, cols), lambda i: (i, 0)),
        ),
        compiler_params=pltpu.CompilerParams(
            dimension_semantics=("parallel",),
        ),
        cost_estimate=pl.CostEstimate(
            flops=0,
            transcendentals=0,
            bytes_accessed=2 * rows * cols * itemsize,
        ),
    )(x2d)


@jax.jit
def _skip_one_materialized(x: jax.Array) -> jax.Array:
    """Identity copy of a single tensor of any rank through the Pallas kernel."""
    orig_shape = x.shape
    n = x.size
    if n == 0:
        return x

    flat = x.reshape(-1)

    # Pick the widest lane-dense width (multiple of 128) that divides n.
    lanes = next((l for l in _LANE_WIDTHS if n % l == 0), None)
    if lanes is None:
        if n < 128:
            lanes = n                    # tiny array: single full-extent row
            n_padded = n
        else:
            lanes = 128
            n_padded = pl.cdiv(n, lanes) * lanes
            flat = jnp.pad(flat, (0, n_padded - n))
    else:
        n_padded = n

    x2d = flat.reshape(n_padded // lanes, lanes)
    y2d = _identity_copy_2d(x2d)
    return y2d.reshape(-1)[:n].reshape(orig_shape)


def _map_structure(fn, x):
    if isinstance(x, (tuple, list)):
        items = [_map_structure(fn, t) for t in x]
        if hasattr(x, "_fields"):        # namedtuple
            return type(x)(*items)
        return type(x)(items)
    return fn(x)


# ------------------------------- Public API -------------------------------- #

def skip_layer(x, *args, **kwargs):
    """JAX equivalent of SkipLayer.forward.

    Returns the input (tensor or tuple of tensors) unchanged and safely
    ignores any extra positional / keyword arguments.  A true identity needs
    no kernel launch and no HBM traffic at all.
    """
    return x


def skip_layer_materialized(x, *args, **kwargs):
    """Same semantics as `skip_layer`, but forces a fresh output buffer by
    routing every tensor through the Pallas identity-copy kernel (only useful
    when a physical copy is actually required)."""
    return _map_structure(_skip_one_materialized, x)


# --------------------------------- Demo ------------------------------------ #

if __name__ == "__main__":
    key = jax.random.PRNGKey(0)
    k1, k2 = jax.random.split(key)

    # Small NCHW input, as a conv-style layer replacement would see.
    x = jax.random.normal(k1, (2, 4, 16, 16), dtype=jnp.float32)

    # Primary (zero-cost) identity path, extra args ignored.
    y = skip_layer(x, "extra_positional_arg", some_kwarg=123)
    y = jax.block_until_ready(y)
    assert y.shape == x.shape and y.dtype == x.dtype
    assert bool(jnp.all(y == x))

    # Pallas copy path (materialized identity) — single tensor.
    y_copy = jax.block_until_ready(skip_layer_materialized(x, "ignored", k=1))
    assert y_copy.shape == x.shape and y_copy.dtype == x.dtype
    assert bool(jnp.all(y_copy == x))

    # Pallas copy path — tuple of tensors.
    x2 = jax.random.normal(k2, (2, 8, 8), dtype=jnp.float32)
    y_tup = jax.block_until_ready(skip_layer_materialized((x, x2)))
    assert bool(jnp.all(y_tup[0] == x)) and bool(jnp.all(y_tup[1] == x2))

    print("KERNEL_OK")
</pallas_src>

<mosaic_0001>
module attributes {stable_mosaic.version = 11 : i64} {
  func.func @_identity_kernel(%arg0: i32, %arg1: memref<1x2048xf32, #tpu.memory_space<vmem>>, %arg2: memref<1x2048xf32, #tpu.memory_space<vmem>>) attributes {dimension_semantics = [#tpu.dimension_semantics<parallel>], iteration_bounds = array<i64: 1>, scalar_prefetch = 0 : i64, scratch_operands = 0 : i64, tpu.core_type = #tpu.core_type<tc>, window_params = [{transform_indices = @transform_0, window_bounds = array<i64: 1, 2048>}, {transform_indices = @transform_1, window_bounds = array<i64: 1, 2048>}]} {
    %c0 = arith.constant 0 : index
    %c0_0 = arith.constant 0 : index
    %0 = vector.load %arg1[%c0, %c0_0] : memref<1x2048xf32, #tpu.memory_space<vmem>>, vector<1x2048xf32>
    %c0_1 = arith.constant 0 : index
    %c0_2 = arith.constant 0 : index
    %1 = vector.load %arg2[%c0_1, %c0_2] : memref<1x2048xf32, #tpu.memory_space<vmem>>, vector<1x2048xf32>
    tpu.vector_store %arg2[%c0_1, %c0_2], %0 {strides = array<i32>} : memref<1x2048xf32, #tpu.memory_space<vmem>>, vector<1x2048xf32>,
    return
  }
  func.func @transform_0(%arg0: i32) -> (i32, i32) {
    %c0_i32 = arith.constant 0 : i32
    %c0_i32_0 = arith.constant 0 : i32
    return %arg0, %c0_i32 : i32, i32
  }
  func.func @transform_1(%arg0: i32) -> (i32, i32) {
    %c0_i32 = arith.constant 0 : i32
    %c0_i32_0 = arith.constant 0 : i32
    return %arg0, %c0_i32 : i32, i32
  }
}

</mosaic_0001>

<bundles_post_ra>
// kernel: _skip_one_materialized.1
= control target key start
LH: loop header
LB: loop body
LE: loop exit
PB: predicated region body
PF: predicated region fallthrough
CT: control target
= control target key end

     0   :  { %s38_s0 = inlined_call_operand.vmem [shape: f32[1,2048], index: 0, kind: input, shape index: {}]   ;;  %s39_s1 = inlined_call_operand.vmem [shape: f32[1,2048], index: 1, kind: output, shape index: {}]  }
   0x1   :  { %v8_v0 = vld [vmem:[%s38_s0] sm:$0xff]  ;;  %v9_v1 = vld [vmem:[%s38_s0 + $0x8] sm:$0xff] }
   0x2   :  { %10 = vst [vmem:[%s39_s1] sm:$0xff] %v8_v0  ;;  %11 = vst [vmem:[%s39_s1 + $0x8] sm:$0xff] %v9_v1 }

</bundles_post_ra>
